<compile_context>
chip_gen: v7x
topology: tpu7x:2x2x1
jax: 0.10.0
libtpu: 0.0.40
codegen_flags: <defaults>
</compile_context>

<pallas_src>
import functools

import jax
import jax.numpy as jnp
from jax.experimental import pallas as pl
from jax.experimental.pallas import tpu as pltpu

# ---- deterministic "constructor" constants -------------------------------
TIME_STEP = 0.001        # ps
TEMPERATURE = 300.0      # K
FRICTION = 10.0          # 1/ps
SPRING_K = 100.0         # kJ/mol/nm^2 : synthetic harmonic potential stiffness
MOLAR_GAS_CONSTANT_R = 0.0083144621  # kJ / (mol K)


def langevin_kernel(x_ref, v_ref, noise_ref, a_ref, vcoeff_ref,
                    x_out_ref, v_out_ref, *, time_step, damp):
    """One Langevin step on a lane-dense (TB, F) row block."""
    x = x_ref[...].astype(jnp.float32)
    v = v_ref[...].astype(jnp.float32)
    noise = noise_ref[...].astype(jnp.float32)
    a = a_ref[...]        # (1, F) -> broadcasts over rows
    vc = vcoeff_ref[...]  # (1, F)

    # v = v + 0.5*dt*force(x)/m  with force(x) = -k*x  ->  v - a*x
    v1 = v - a * x
    # v = v - friction*dt*v + noise*vcoeff  ->  damp*v + noise*vc
    v2 = damp * v1 + noise * vc
    # x = x + dt*v
    x_new = x + time_step * v2
    # v = v + 0.5*dt*force(x_new)/m
    v_new = v2 - a * x_new

    x_out_ref[...] = x_new.astype(x_out_ref.dtype)
    v_out_ref[...] = v_new.astype(v_out_ref.dtype)


def _pick_row_block(B, F, itemsize, target_bytes=1 << 20):
    """Rows per block: ~target_bytes per stream tile, multiple of 8 dividing B,
    and at least 2 grid blocks when possible (v7x megacore)."""
    rows = max(1, target_bytes // max(1, F * itemsize))
    rows = min(rows, B)
    if B % 8:
        return B                      # tiny/odd batch: one full-batch block
    if B >= 16:
        rows = min(rows, B // 2)      # keep >= 2 blocks for v7x's 2 TCs
    rows = max(8, (rows // 8) * 8)
    while B % rows:
        rows -= 8
    return rows


def langevin_step(x, v, noise, masses, *, time_step=TIME_STEP,
                  friction=FRICTION, temperature=TEMPERATURE,
                  spring_k=SPRING_K):
    """Pallas wrapper: lane-dense (B, N*3) layout, row-blocked grid over batch."""
    B, N, D = x.shape
    F = N * D
    kbt = MOLAR_GAS_CONSTANT_R * temperature

    # Host-folded per-element constants, replicated per coordinate -> (1, F).
    inv_m = (1.0 / masses).astype(jnp.float32)                             # (N,)
    a = jnp.repeat(0.5 * time_step * spring_k * inv_m, D)[None, :]         # (1, F)
    vcoeff = jnp.repeat(
        jnp.sqrt(2.0 * friction * kbt * time_step * inv_m), D)[None, :]    # (1, F)
    damp = float(1.0 - friction * time_step)

    x2 = x.reshape(B, F)
    v2 = v.reshape(B, F)
    n2 = noise.reshape(B, F)

    tb = _pick_row_block(B, F, x2.dtype.itemsize)
    grid = (pl.cdiv(B, tb),)

    state_spec = pl.BlockSpec((tb, F), lambda b: (b, 0))
    par_spec = pl.BlockSpec((1, F), lambda b: (0, 0))   # resident across grid

    kernel = functools.partial(langevin_kernel,
                               time_step=float(time_step), damp=damp)

    x_out, v_out = pl.pallas_call(
        kernel,
        out_shape=(jax.ShapeDtypeStruct((B, F), x.dtype),
                   jax.ShapeDtypeStruct((B, F), v.dtype)),
        grid_spec=pltpu.PrefetchScalarGridSpec(
            num_scalar_prefetch=0,
            grid=grid,
            in_specs=[state_spec, state_spec, state_spec, par_spec, par_spec],
            out_specs=[state_spec, state_spec],
        ),
        input_output_aliases={0: 0, 1: 1},   # update x, v in place
        compiler_params=pltpu.CompilerParams(
            dimension_semantics=("parallel",),
            vmem_limit_bytes=32 * 1024 * 1024),
    )(x2, v2, n2, a, vcoeff)
    return x_out.reshape(B, N, D), v_out.reshape(B, N, D)


def langevin_step_ref(x, v, noise, masses, *, time_step=TIME_STEP,
                      friction=FRICTION, temperature=TEMPERATURE,
                      spring_k=SPRING_K):
    """Pure-JAX reference mirroring the PyTorch forward."""
    kbt = MOLAR_GAS_CONSTANT_R * temperature
    m = masses[..., None]                             # (N, 1)
    vcoeff = jnp.sqrt(2.0 * friction / m * kbt * time_step)

    def force(xx):
        return -spring_k * xx

    v = v + 0.5 * time_step * force(x) / m
    csi = noise * vcoeff
    v = v - friction * v * time_step + csi
    x = x + time_step * v
    v = v + 0.5 * time_step * force(x) / m
    return x, v


if __name__ == "__main__":
    B, N, D = 16, 64, 3
    key = jax.random.PRNGKey(0)
    kx, kv, kn = jax.random.split(key, 3)
    x = jax.random.normal(kx, (B, N, D), dtype=jnp.float32)
    v = jax.random.normal(kv, (B, N, D), dtype=jnp.float32)
    noise = jax.random.normal(kn, (B, N, D), dtype=jnp.float32)
    masses = jnp.linspace(1.0, 16.0, N).astype(jnp.float32)  # amu, deterministic

    # Reference first (kernel aliases x/v buffers at the XLA level).
    x_ref, v_ref = langevin_step_ref(x, v, noise, masses)

    x_new, v_new = langevin_step(x, v, noise, masses)
    jax.block_until_ready((x_new, v_new))

    assert jnp.allclose(x_new, x_ref, atol=1e-5, rtol=1e-5)
    assert jnp.allclose(v_new, v_ref, atol=1e-5, rtol=1e-5)

    print("KERNEL_OK")
</pallas_src>

<mosaic_0001>
module attributes {stable_mosaic.version = 11 : i64} {
  func.func @langevin_kernel(%arg0: i32, %arg1: memref<8x192xf32, #tpu.memory_space<vmem>>, %arg2: memref<8x192xf32, #tpu.memory_space<vmem>>, %arg3: memref<8x192xf32, #tpu.memory_space<vmem>>, %arg4: memref<1x192xf32, #tpu.memory_space<vmem>>, %arg5: memref<1x192xf32, #tpu.memory_space<vmem>>, %arg6: memref<8x192xf32, #tpu.memory_space<vmem>>, %arg7: memref<8x192xf32, #tpu.memory_space<vmem>>) attributes {dimension_semantics = [#tpu.dimension_semantics<parallel>], iteration_bounds = array<i64: 2>, scalar_prefetch = 0 : i64, scratch_operands = 0 : i64, tpu.core_type = #tpu.core_type<tc>, window_params = [{transform_indices = @transform_0, window_bounds = array<i64: 8, 192>}, {transform_indices = @transform_1, window_bounds = array<i64: 8, 192>}, {transform_indices = @transform_2, window_bounds = array<i64: 8, 192>}, {pipeline_mode = #tpu.pipeline_mode<synchronous>, transform_indices = @transform_3, window_bounds = array<i64: 1, 192>}, {pipeline_mode = #tpu.pipeline_mode<synchronous>, transform_indices = @transform_4, window_bounds = array<i64: 1, 192>}, {transform_indices = @transform_5, window_bounds = array<i64: 8, 192>}, {transform_indices = @transform_6, window_bounds = array<i64: 8, 192>}]} {
    %c0 = arith.constant 0 : index
    %c0_0 = arith.constant 0 : index
    %0 = vector.load %arg1[%c0, %c0_0] : memref<8x192xf32, #tpu.memory_space<vmem>>, vector<8x192xf32>
    %c0_1 = arith.constant 0 : index
    %c0_2 = arith.constant 0 : index
    %1 = vector.load %arg2[%c0_1, %c0_2] : memref<8x192xf32, #tpu.memory_space<vmem>>, vector<8x192xf32>
    %c0_3 = arith.constant 0 : index
    %c0_4 = arith.constant 0 : index
    %2 = vector.load %arg3[%c0_3, %c0_4] : memref<8x192xf32, #tpu.memory_space<vmem>>, vector<8x192xf32>
    %c0_5 = arith.constant 0 : index
    %c0_6 = arith.constant 0 : index
    %3 = vector.load %arg4[%c0_5, %c0_6] : memref<1x192xf32, #tpu.memory_space<vmem>>, vector<1x192xf32>
    %c0_7 = arith.constant 0 : index
    %c0_8 = arith.constant 0 : index
    %4 = vector.load %arg5[%c0_7, %c0_8] : memref<1x192xf32, #tpu.memory_space<vmem>>, vector<1x192xf32>
    %5 = vector.broadcast %3 : vector<1x192xf32> to vector<8x192xf32>
    %6 = arith.mulf %5, %0 : vector<8x192xf32>
    %7 = arith.subf %1, %6 : vector<8x192xf32>
    %cst = arith.constant 9.900000e-01 : f32
    %8 = vector.broadcast %cst : f32 to vector<8x192xf32>
    %9 = arith.mulf %8, %7 : vector<8x192xf32>
    %10 = vector.broadcast %4 : vector<1x192xf32> to vector<8x192xf32>
    %11 = arith.mulf %2, %10 : vector<8x192xf32>
    %12 = arith.addf %9, %11 : vector<8x192xf32>
    %cst_9 = arith.constant 1.000000e-03 : f32
    %13 = vector.broadcast %cst_9 : f32 to vector<8x192xf32>
    %14 = arith.mulf %13, %12 : vector<8x192xf32>
    %15 = arith.addf %0, %14 : vector<8x192xf32>
    %16 = vector.broadcast %3 : vector<1x192xf32> to vector<8x192xf32>
    %17 = arith.mulf %16, %15 : vector<8x192xf32>
    %18 = arith.subf %12, %17 : vector<8x192xf32>
    %c0_10 = arith.constant 0 : index
    %c0_11 = arith.constant 0 : index
    %19 = vector.load %arg6[%c0_10, %c0_11] : memref<8x192xf32, #tpu.memory_space<vmem>>, vector<8x192xf32>
    tpu.vector_store %arg6[%c0_10, %c0_11], %15 {strides = array<i32>} : memref<8x192xf32, #tpu.memory_space<vmem>>, vector<8x192xf32>,
    %c0_12 = arith.constant 0 : index
    %c0_13 = arith.constant 0 : index
    %20 = vector.load %arg7[%c0_12, %c0_13] : memref<8x192xf32, #tpu.memory_space<vmem>>, vector<8x192xf32>
    tpu.vector_store %arg7[%c0_12, %c0_13], %18 {strides = array<i32>} : memref<8x192xf32, #tpu.memory_space<vmem>>, vector<8x192xf32>,
    return
  }
  func.func @transform_0(%arg0: i32) -> (i32, i32) {
    %c0_i32 = arith.constant 0 : i32
    %c0_i32_0 = arith.constant 0 : i32
    return %arg0, %c0_i32 : i32, i32
  }
  func.func @transform_1(%arg0: i32) -> (i32, i32) {
    %c0_i32 = arith.constant 0 : i32
    %c0_i32_0 = arith.constant 0 : i32
    return %arg0, %c0_i32 : i32, i32
  }
  func.func @transform_2(%arg0: i32) -> (i32, i32) {
    %c0_i32 = arith.constant 0 : i32
    %c0_i32_0 = arith.constant 0 : i32
    return %arg0, %c0_i32 : i32, i32
  }
  func.func @transform_3(%arg0: i32) -> (i32, i32) {
    %c0_i32 = arith.constant 0 : i32
    %c0_i32_0 = arith.constant 0 : i32
    %c0_i32_1 = arith.constant 0 : i32
    return %c0_i32, %c0_i32_0 : i32, i32
  }
  func.func @transform_4(%arg0: i32) -> (i32, i32) {
    %c0_i32 = arith.constant 0 : i32
    %c0_i32_0 = arith.constant 0 : i32
    %c0_i32_1 = arith.constant 0 : i32
    return %c0_i32, %c0_i32_0 : i32, i32
  }
  func.func @transform_5(%arg0: i32) -> (i32, i32) {
    %c0_i32 = arith.constant 0 : i32
    %c0_i32_0 = arith.constant 0 : i32
    return %arg0, %c0_i32 : i32, i32
  }
  func.func @transform_6(%arg0: i32) -> (i32, i32) {
    %c0_i32 = arith.constant 0 : i32
    %c0_i32_0 = arith.constant 0 : i32
    return %arg0, %c0_i32 : i32, i32
  }
}

</mosaic_0001>

<bundles_post_ra>
// kernel: tpu_custom_call.1
= control target key start
LH: loop header
LB: loop body
LE: loop exit
PB: predicated region body
PF: predicated region fallthrough
CT: control target
= control target key end

     0   :  { %12 = vsyncpa [#allocation3], 0  ;;  %s1115_s0 = inlined_call_operand.hbm [shape: f32[16,192], index: 0, kind: input, shape index: {}, may-alias: {0,5}]   ;;  %s1116_s1 = inlined_call_operand.hbm [shape: f32[16,192], index: 1, kind: input, shape index: {}, may-alias: {1,6}]   ;;  %s1117_s2 = inlined_call_operand.vmem [shape: f32[16,192], index: 2, kind: input, shape index: {}]   ;;  %s1118_s3 = inlined_call_operand.vmem [shape: f32[1,192], index: 3, kind: input, shape index: {}]   ;;  %s1119_s4 = inlined_call_operand.vmem [shape: f32[1,192], index: 4, kind: input, shape index: {}]   ;;  %s1120_s5 = inlined_call_operand.hbm [shape: f32[16,192], index: 5, kind: output, shape index: {0}, may-alias: {0,5}]   ;;  %s1121_s6 = inlined_call_operand.hbm [shape: f32[16,192], index: 6, kind: output, shape index: {1}, may-alias: {1,6}]  }
   0x1   :  { %14 = vsyncpa [#allocation3 + $0x1], 0 }
   0x2   :  { %15 = vsyncpa [#allocation6], 0 }
   0x3   :  { %17 = vsyncpa [#allocation6 + $0x1], 0 }
   0x4   :  { %18 = vsyncpa [#allocation4], 0 }
   0x5   :  { %20 = vsyncpa [#allocation4 + $0x1], 0 }
   0x6   :  { %21 = vsyncpa [#allocation9], 0 }
   0x7   :  { %23 = vsyncpa [#allocation9 + $0x1], 0  ;;  %s849_s21 = smov 0   ;;  %s851_s22 = smov 0  }
   0x8   :  { %s853_s23 = smov 0   ;;  %s855_s24 = smov 0  }
   0x9 LB: > { %s870_s25 = sadd.s32 4294967295, %s808_s24   ;;  %s561_s26 = sadd.s32 4294967294, %s808_s24   ;;  %s808_s24 = sphi %s855_s24, %s1140_s24   ;;  %s804_s23 = sphi %s853_s23, %s1139_s23   ;;  %s800_s22 = sphi %s851_s22, %s1138_s22   ;;  %s796_s21 = sphi %s849_s21, %s1137_s21  }
   0xa   : > { %s874_s27 = sadd.s32 1, %s808_s24   ;;  %s36_s28 = sadd.s32 1, %s804_s23 }
   0xb   : > { %s33_s29 = ssub.s32 %s808_s24, %s874_s27  ;;  %p43_p0 = scmp.ne.s32.totalorder %s804_s23, %s800_s22 }
   0xc   : > { %p34_p1 = scmp.eq.s32.totalorder %s33_s29, 0  ;;  %p44_p2 = scmp.eq.s32.totalorder %s808_s24, 0 }
   0xd   : > { %p49_p3 = scmp.ne.s32.totalorder %s800_s22, %s796_s21  ;;  %p50_p4 = scmp.eq.s32.totalorder %s870_s25, 0 }
   0xe   : > { %s886_s30 = scalar_select %p34_p1, %s804_s23, %s36_s28  }
   0xf   : > { %p888_p5 = por %p44_p2, %p43_p0  ;;  %p892_p6 = por %p50_p4, %p49_p3 }
  0x10   : > { %p167_p7 = scmp.eq.s32.totalorder %s870_s25, 1  ;;  %p173_p8 = scmp.eq.s32.totalorder %s561_s26, 1 }
  0x11   : > { %s1125_s8 = scalar_select %p892_p6, 1, 0 }
  0x12   : > { %p612_p10 = scmp.lt.s32.totalorder %s808_s24, 2  ;;  %p899_p11 = por %p167_p7, %p43_p0 }
  0x13   : > { %p903_p12 = por %p173_p8, %p49_p3  ;;  %s908_s11 = sand.u32 1, %s804_s23  }
  0x14   : > { %s1126_s9 = scalar_select %p899_p11, 1, 0 }
  0x15   : > { %s1127_s10 = scalar_select %p903_p12, 1, 0 }
  0x16   : > { %s585_s12 = sshll.u32 %s808_s24, 8  ;;  %s564_s13 = sshll.u32 %s908_s11, 4 }
  0x17   : > { %s917_s16 = scalar_lea.hbm %s1115_s0, %s585_s12  ;;  %s229_s17 = scalar_lea.vmem [#allocation2], %s564_s13 }
  0x18   : > { %s237_s18 = sshll.u32 %s229_s17, 4  ;;  %p923_p13 = pnand %p612_p10, %p888_p5  ;;  %s927_s18 = int_to_ptr.vmem [resolvable:$true] %s237_s18 }
  0x19   : > { %s226_s20 = scalar_lea.sflag [#allocation3], %s908_s11  ;;  %s646_s26 = scalar_lea.hbm %s917_s16, 256 }
  0x1a   : > { %p647_p2 = scmp.ne.s32.totalorder %s917_s16, %s646_s26  ;;  %p648_p3 = pneg %p923_p13 }
  0x1b   : > { %s651_s7 = scalar_lea.hbm %s1115_s0, 512  ;;  %p652_p5 = scmp.lt.u32.totalorder %s917_s16, %s1115_s0 }
  0x1c   : > { %p649_p4 = pnand %p648_p3, %p647_p2  ;;  %p653_p8 = scmp.lt.u32.totalorder %s651_s7, %s646_s26 }
  0x1d   : > { %p655_p9 = scmp.lt.u32.totalorder %s646_s26, %s917_s16 }
  0x1e   : > { %p650_p7 = pneg %p649_p4  ;;  %p654_p10 = por %p653_p8, %p652_p5 }
  0x20   : > { %p656_p0 = por %p655_p9, %p654_p10 }
  0x22   : > { %p657_p1 = pnand %p656_p0, %p650_p7 }
  0x24   : > { %660 = shalt.err (!%p657_p1)
}
  0x25   : > { %s661_s17 = scalar_lea.vmem %s927_s18, 256  ;;  %s810_s28 = smov [#allocation2]  }
  0x26   : > { %p662_p2 = scmp.ne.s32.totalorder %s927_s18, %s661_s17  ;;  %s666_s29 = sshll.u32 %s810_s28, 4  ;;  %s667_s29 = int_to_ptr.vmem [resolvable:$false] %s666_s29 }
  0x27   : > { %s668_s14 = scalar_lea.vmem %s667_s29, 512  ;;  %p669_p11 = scmp.lt.s32.totalorder %s927_s18, %s667_s29 }
  0x28   : > { %p664_p4 = pnand %p662_p2, %p648_p3  ;;  %p670_p5 = scmp.lt.s32.totalorder %s668_s14, %s661_s17 }
  0x2a   : > { %p665_p12 = pneg %p664_p4  ;;  %p671_p8 = por %p670_p5, %p669_p11 }
  0x2c   : > { %p672_p9 = pnand %p671_p8, %p665_p12 }
  0x2e   : > { %675 = shalt.err (!%p672_p9)
}
  0x2f   : > { %601 = dma.hbm_to_vmem [thread:$0]  (!%p923_p13), %s917_s16, 256, %s927_s18, %s226_s20  }
  0x30   : > { %p1129_p0 = scmp.lt.s32.totalorder %s808_s24, 3  ;;  %p1130_p1 = scmp.ge.s32.totalorder %s808_s24, 1 }
  0x31   : > { %s970_s17 = scalar_lea.hbm %s1116_s1, %s585_s12  ;;  %s248_s28 = scalar_lea.vmem [#allocation5], %s564_s13 }
  0x32   : > { %p961_p7 = pnand %p1130_p1, %p1129_p0  ;;  %s256_s29 = sshll.u32 %s248_s28, 4  ;;  %s257_s29 = int_to_ptr.vmem [resolvable:$true] %s256_s29 }
  0x33   : > { %s245_s16 = scalar_lea.sflag [#allocation6], %s908_s11  ;;  %s676_s18 = scalar_lea.hbm %s970_s17, 256 }
  0x34   : > { %s1131_s26 = scalar_select %p961_p7, 1, 0 }
  0x35   : > { %p677_p11 = scmp.ne.s32.totalorder %s970_s17, %s676_s18  ;;  %s681_s12 = scalar_lea.hbm %s1116_s1, 512 }
  0x36   : > { %p682_p2 = scmp.lt.u32.totalorder %s970_s17, %s1116_s1  ;;  %p683_p4 = scmp.lt.u32.totalorder %s681_s12, %s676_s18 }
  0x37   : > { %p679_p12 = pnand %p677_p11, %p648_p3  ;;  %p685_p8 = scmp.lt.u32.totalorder %s676_s18, %s970_s17 }
  0x38   : > { %p684_p5 = por %p683_p4, %p682_p2 }
  0x39   : > { %p680_p10 = pneg %p679_p12 }
  0x3a   : > { %p686_p9 = por %p685_p8, %p684_p5 }
  0x3c   : > { %p687_p0 = pnand %p686_p9, %p680_p10 }
  0x3e   : > { %690 = shalt.err (!%p687_p0)
}
  0x3f   : > { %s691_s11 = scalar_lea.vmem %s257_s29, 256  ;;  %s811_s13 = smov [#allocation5]  }
  0x40   : > { %p692_p1 = scmp.ne.s32.totalorder %s257_s29, %s691_s11  ;;  %s696_s28 = sshll.u32 %s811_s13, 4  ;;  %s697_s28 = int_to_ptr.vmem [resolvable:$false] %s696_s28 }
  0x41   : > { %s698_s20 = scalar_lea.vmem %s697_s28, 512  ;;  %p699_p6 = scmp.lt.s32.totalorder %s257_s29, %s697_s28 }
  0x42   : > { %p694_p11 = pnand %p692_p1, %p648_p3  ;;  %p700_p7 = scmp.lt.s32.totalorder %s698_s20, %s691_s11 }
  0x44   : > { %p695_p12 = pneg %p694_p11  ;;  %p701_p2 = por %p700_p7, %p699_p6 }
  0x46   : > { %p702_p4 = pnand %p701_p2, %p695_p12 }
  0x48   : > { %705 = shalt.err (!%p702_p4)
}
  0x49   : > { %604 = dma.hbm_to_vmem [thread:$0]  (!%p923_p13), %s970_s17, 256, %s257_s29, %s245_s16  }
  0x4a   : > { %p1132_p10 = scmp.ne.s32.totalorder %s1131_s26, 0 }
  0x4b   : > { %s997_s18 = sand.u32 (!%p1132_p10), 1, %s800_s22   ;;  %p1133_p6 = scmp.ne.s32.totalorder (!%p1132_p10), %s1125_s8, 0 }
  0x4c   : > { %273 = sbr.rel (%p1132_p10) target bundleno = 143 (0x8f), region = 40  ;;  %s1000_s14 = sshll.u32 (!%p1132_p10), %s997_s18, 4 }
  0x4d   : > { %s276_s12 = scalar_lea.sflag (!%p1132_p10), [#allocation3], %s997_s18  ;;  %s279_s7 = scalar_lea.vmem (!%p1132_p10), [#allocation2], %s1000_s14 }
  0x53   : > { %779 = dma.done.wait (%p1133_p6), %s276_s12, 256  }
  0x54   : > { %781 = vsyncadd (%p1133_p6), %s276_s12, 4294967040  ;;  %s285_s19 = scalar_lea.sflag [#allocation6], %s997_s18  ;;  %s288_s26 = scalar_lea.vmem [#allocation5], %s1000_s14 }
  0x55   : > { %783 = dma.done.wait (%p1133_p6), %s285_s19, 256  }
  0x56   : > { %785 = vsyncadd (%p1133_p6), %s285_s19, 4294967040  ;;  %p332_p13 = scmp.lt.s32.totalorder %s870_s25, 1  ;;  %v346_v0 = vlaneseq  ;;  %v337_v4 = vld [vmem:[%s279_s7] sm:$0xff]  ;;  %v338_v12 = vld [vmem:[%s279_s7 + $0x8] sm:$0xff]  ;;  %s324_s12 = scalar_lea.vmem [#allocation7], %s1000_s14  ;;  %vm386_vm0 = vcmask 523264  }
  0x57   : > { %v343_v5 = vld [vmem:[%s1118_s3] sm:$0x3]  ;;  %v340_v15 = vld [vmem:[%s288_s26 + $0x8] sm:$0xff]  ;;  %s410_s19 = sshll.u32 %s324_s12, 4  ;;  %s588_s7 = sshll.u32 %s870_s25, 8  ;;  %s1027_s19 = int_to_ptr.vmem [resolvable:$true] %s410_s19 }
  0x58   : > { %s333_s17 = scalar_select %p332_p13, %s870_s25, 1  ;;  %v347_v1 = vshrl.u32 %v346_v0, 7  ;;  %v344_v6 = vld [vmem:[%s1119_s4] sm:$0x3] }
  0x59   : > { %v339_v7 = vld [vmem:[%s288_s26] sm:$0xff]  ;;  %s1030_s26 = scalar_lea.vmem [#allocation8], %s1000_s14  ;;  %s1038_s15 = scalar_lea.hbm %s1120_s5, %s588_s7 }
  0x5a   : > { %s587_s29 = sshll.u32 %s333_s17, 4  ;;  %v348_v2 = vsub.s32 0, %v347_v1  ;;  %v352_v3 = vsub.s32 1, %v347_v1  ;;  %s424_s17 = sshll.u32 %s1030_s26, 4  ;;  %s1041_s17 = int_to_ptr.vmem [resolvable:$true] %s424_s17 }
  0x5b   : > { %s336_s11 = scalar_lea.vmem %s1117_s2, %s587_s29  ;;  %s391_s14 = scalar_lea.sflag [#allocation4], %s997_s18 }
  0x5c   : > { %v349_v8 = vrot.slane %v343_v5, %v348_v2  ;;  %v353_v9 = vrot.slane %v343_v5, %v352_v3  ;;  %v366_v10 = vrot.slane %v344_v6, %v348_v2  ;;  %v370_v11 = vrot.slane %v344_v6, %v352_v3  ;;  %v341_v13 = vld [vmem:[%s336_s11] sm:$0xff]  ;;  %v342_v14 = vld [vmem:[%s336_s11 + $0x8] sm:$0xff]  ;;  %s706_s11 = scalar_lea.vmem %s1027_s19, 256  ;;  %p1134_p7 = scmp.ne.s32.totalorder %s1126_s9, 0 }
  0x5d   : > { %p707_p3 = scmp.ne.s32.totalorder %s1027_s19, %s706_s11  ;;  %s812_s13 = smov [#allocation7]  }
  0x5e   : > { %v356_v16 = vmul.f32 %v349_v8, %v337_v4  ;;  %v357_v17 = vmul.f32 %v353_v9, %v338_v12  ;;  %v373_v19 = vmul.f32 %v366_v10, %v341_v13  ;;  %v374_v21 = vmul.f32 %v370_v11, %v342_v14  ;;  %s710_s28 = sshll.u32 %s812_s13, 4  ;;  %s711_s28 = int_to_ptr.vmem [resolvable:$false] %s710_s28 }
  0x5f   : > { %p708_p5 = pnand %p707_p3, %p1134_p7  ;;  %s712_s8 = scalar_lea.vmem %s711_s28, 512 }
  0x60   : > { %v358_v18 = vsub.f32 %v339_v7, %v356_v16  ;;  %v359_v20 = vsub.f32 %v340_v15, %v357_v17  ;;  %p713_p9 = scmp.lt.s32.totalorder %s1027_s19, %s711_s28  ;;  %p714_p0 = scmp.lt.s32.totalorder %s712_s8, %s706_s11 }
  0x61   : > { %p709_p8 = pneg %p708_p5 }
  0x62   : > { %v360_v22 = vmul.f32 0.99, %v358_v18  ;;  %v361_v23 = vmul.f32 0.99, %v359_v20  ;;  %p715_p1 = por %p714_p0, %p713_p9 }
  0x64   : > { %v375_v24 = vadd.f32 %v373_v19, %v360_v22  ;;  %v376_v25 = vadd.f32 %v374_v21, %v361_v23  ;;  %p716_p11 = pnand %p715_p1, %p709_p8 }
  0x66   : > { %v377_v26 = vmul.f32 0.001, %v375_v24  ;;  %v378_v27 = vmul.f32 0.001, %v376_v25 }
  0x68   : > { %v379_v28 = vadd.f32 %v377_v26, %v337_v4  ;;  %v380_v29 = vadd.f32 %v378_v27, %v338_v12 }
  0x6a   : > { %385 = vst [vmem:[%s324_s12] sm:$0xff] %v379_v28  ;;  %387 = vst.msk [vmem:[%s324_s12 + $0x8] sm:$0xff] %vm386_vm0, %v380_v29  ;;  %v381_v30 = vmul.f32 %v379_v28, %v349_v8  ;;  %v382_v31 = vmul.f32 %v380_v29, %v353_v9 }
  0x6b   : > { %719 = shalt.err (!%p716_p11)
}
  0x6c   : > { %s720_s20 = scalar_lea.hbm %s1038_s15, 256  ;;  %s724_s16 = scalar_lea.hbm %s1120_s5, 512 }
  0x6d   : > { %p721_p12 = scmp.ne.s32.totalorder %s1038_s15, %s720_s20  ;;  %p725_p10 = scmp.lt.u32.totalorder %s1038_s15, %s1120_s5 }
  0x6e   : > { %p726_p6 = scmp.lt.u32.totalorder %s724_s16, %s720_s20  ;;  %p728_p3 = scmp.lt.u32.totalorder %s720_s20, %s1038_s15 }
  0x6f   : > { %p722_p2 = pnand %p721_p12, %p1134_p7 }
  0x70   : > { %p727_p13 = por %p726_p6, %p725_p10 }
  0x71   : > { %p723_p4 = pneg %p722_p2 }
  0x72   : > { %p729_p5 = por %p728_p3, %p727_p13 }
  0x74   : > { %p730_p8 = pnand %p729_p5, %p723_p4 }
  0x76   : > { %733 = shalt.err (!%p730_p8)
}
  0x77   : > { %594 = dma.vmem_to_hbm [thread:$0]  (%p1134_p7), %s1027_s19, 256, %s1038_s15, %s391_s14   ;;  %v383_v32 = vsub.f32 %v375_v24, %v381_v30  ;;  %v384_v33 = vsub.f32 %v376_v25, %v382_v31 }
  0x78   : > { %s1070_s20 = scalar_lea.hbm %s1121_s6, %s588_s7  ;;  %s396_s12 = scalar_lea.sflag [#allocation9], %s997_s18 }
  0x79   : > { %388 = vst [vmem:[%s1030_s26] sm:$0xff] %v383_v32  ;;  %389 = vst.msk [vmem:[%s1030_s26 + $0x8] sm:$0xff] %vm386_vm0, %v384_v33  ;;  %s734_s29 = scalar_lea.vmem %s1041_s17, 256  ;;  %s813_s16 = smov [#allocation8]  }
  0x7a   : > { %p735_p9 = scmp.ne.s32.totalorder %s1041_s17, %s734_s29  ;;  %s738_s13 = sshll.u32 %s813_s16, 4  ;;  %s739_s13 = int_to_ptr.vmem [resolvable:$false] %s738_s13 }
  0x7b   : > { %s740_s19 = scalar_lea.vmem %s739_s13, 512  ;;  %p741_p11 = scmp.lt.s32.totalorder %s1041_s17, %s739_s13 }
  0x7c   : > { %p736_p0 = pnand %p735_p9, %p1134_p7  ;;  %p742_p12 = scmp.lt.s32.totalorder %s740_s19, %s734_s29 }
  0x7e   : > { %p737_p1 = pneg %p736_p0  ;;  %p743_p2 = por %p742_p12, %p741_p11 }
  0x80   : > { %p744_p4 = pnand %p743_p2, %p737_p1 }
  0x82   : > { %747 = shalt.err (!%p744_p4)
}
  0x83   : > { %s748_s25 = scalar_lea.hbm %s1070_s20, 256  ;;  %s752_s26 = scalar_lea.hbm %s1121_s6, 512 }
  0x84   : > { %p749_p10 = scmp.ne.s32.totalorder %s1070_s20, %s748_s25  ;;  %p753_p3 = scmp.lt.u32.totalorder %s1070_s20, %s1121_s6 }
  0x85   : > { %p754_p5 = scmp.lt.u32.totalorder %s752_s26, %s748_s25  ;;  %p756_p9 = scmp.lt.u32.totalorder %s748_s25, %s1070_s20 }
  0x86   : > { %p750_p6 = pnand %p749_p10, %p1134_p7 }
  0x87   : > { %p755_p8 = por %p754_p5, %p753_p3 }
  0x88   : > { %p751_p13 = pneg %p750_p6 }
  0x89   : > { %p757_p0 = por %p756_p9, %p755_p8 }
  0x8b   : > { %p758_p1 = pnand %p757_p0, %p751_p13 }
  0x8d   : > { %761 = shalt.err (!%p758_p1)
}
  0x8e   : > { %595 = dma.vmem_to_hbm [thread:$0]  (%p1134_p7), %s1041_s17, 256, %s1070_s20, %s396_s12  }
  0x8f PF: > { %s436_s28 = sand.u32 1, %s796_s21   ;;  %p1135_p11 = scmp.ne.s32.totalorder %s1127_s10, 0 }
  0x90   : > { %p1136_p12 = scmp.ge.s32.totalorder %s808_s24, 2  ;;  %s437_s11 = scalar_lea.sflag [#allocation4], %s436_s28 }
  0x92   : > { %p606_p2 = pnand %p1136_p12, %p1135_p11 }
  0x94   : > { %787 = dma.done.wait (!%p606_p2), %s437_s11, 256  }
  0x95   : > { %789 = vsyncadd (!%p606_p2), %s437_s11, 4294967040  ;;  %s446_s8 = scalar_lea.sflag [#allocation9], %s436_s28 }
  0x96   : > { %791 = dma.done.wait (!%p606_p2), %s446_s8, 256  }
  0x97   : > { %793 = vsyncadd (!%p606_p2), %s446_s8, 4294967040  ;;  %p26_p7 = scmp.ge.s32.totalorder %s874_s27, 4   ;;  %s1137_s21 = smov %s800_s22 }
  0x98   : > { %s1138_s22 = smov %s804_s23  ;;  %s1139_s23 = smov %s886_s30 }
  0x99   : > { %s1140_s24 = smov %s874_s27  ;;  %28 = sbr.rel (!%p26_p7) target bundleno = 9 (0x9), region = 118 }
  0xa0   :  { %451 = vsyncpa [#allocation3], 1 }
  0xa1   :  { %453 = vsyncpa [#allocation3 + $0x1], 1 }
  0xa2   :  { %454 = vsyncpa [#allocation6], 1 }
  0xa3   :  { %456 = vsyncpa [#allocation6 + $0x1], 1 }
  0xa4   :  { %457 = vsyncpa [#allocation4], 1 }
  0xa5   :  { %459 = vsyncpa [#allocation4 + $0x1], 1 }
  0xa6   :  { %460 = vsyncpa [#allocation9], 1 }
  0xa7   :  { %462 = vsyncpa [#allocation9 + $0x1], 1 }

</bundles_post_ra>
